<compile_context>
chip_gen: v6e
topology: v6e:2x2x1
jax: 0.10.0
libtpu: 0.0.40
codegen_flags: <defaults>
</compile_context>

<pallas_src>
import jax
import jax.numpy as jnp
from jax.experimental import pallas as pl
from jax.experimental.pallas import tpu as pltpu

NUM_GEOM = 15
NUM_POSS = 11
NUM_SEM = 24
NUM_CLASSES = NUM_GEOM + NUM_POSS + NUM_SEM      # 50
C_PAD = 128                                      # lane-dense padded class axis
TEMPERATURE = 0.07
BASE_TEMPERATURE = 0.07
EPS_LOG = 1e-7
EPS_NORM = 1e-12


def prepare_class_embeddings(all_embeddings, dtype=jnp.bfloat16):
    """One-time prep of the constant class table: zero-pad (C, D) -> (C_PAD, D), pre-
    transpose to (D, C_PAD), and (by default) store in bfloat16 for the MXU.  Padded
    columns are all-zero and are excluded by the table-id / class-id masks."""
    C, D = all_embeddings.shape
    assert C == NUM_CLASSES
    padded = jnp.zeros((C_PAD, D), jnp.float32).at[:C].set(
        all_embeddings.astype(jnp.float32))
    return jnp.transpose(padded).astype(dtype)   # (D, C_PAD)


def _class_mask_rows():
    """Constant (1, C_PAD) int32 rows: column class index and column table id."""
    cls_ids = jnp.arange(C_PAD, dtype=jnp.int32)
    tbl_ids = jnp.where(
        cls_ids < NUM_GEOM, 0,
        jnp.where(cls_ids < NUM_GEOM + NUM_POSS, 1,
                  jnp.where(cls_ids < NUM_CLASSES, 2, 3))).astype(jnp.int32)
    return cls_ids.reshape(1, C_PAD), tbl_ids.reshape(1, C_PAD)


def _partial_loss(feats, emb_t, rel, cls_row, tid_row, valid_rows):
    """Sum of per-item SupCon losses for one tile.

    feats      : (B, D) f32 un-normalized predicted embeddings
    emb_t      : (D, C_PAD) pre-transposed class table (padded columns are zero)
    rel        : (B, 1) i32 global relation id
    cls_row    : (1, C_PAD) i32 column class index
    tid_row    : (1, C_PAD) i32 column table id (0/1/2; 3 for padded columns)
    valid_rows : (B, 1) bool mask of rows that belong to the real batch, or None
    """
    # F.normalize(curr_features, p=2, dim=0) with the 1/temperature factor folded into the
    # per-row scale (EUP rsqrt; avoids an extra (B, C) multiply).
    sq_norm = jnp.sum(feats * feats, axis=1, keepdims=True)                        # (B, 1)
    scale = jax.lax.rsqrt(jnp.maximum(sq_norm, EPS_NORM * EPS_NORM)) * (1.0 / TEMPERATURE)
    feats_s = (feats * scale).astype(emb_t.dtype)          # bf16 cast for the MXU only

    # (B, D) @ (D, C_PAD) on the MXU, f32 accumulation.
    sims = jnp.dot(feats_s, emb_t, preferred_element_type=jnp.float32)             # (B, C)
    # exp without max-subtraction is safe ONLY because both operands are L2-normalized:
    # |sims| <= 1/TEMPERATURE ~= 14.3, far below f32 exp overflow.  Do not remove the
    # normalization or shrink TEMPERATURE without re-adding a row-max subtraction.
    exp_s = jnp.exp(sims)

    # Narrow (B,1) table id of each row's relation; two compares/selects on one column.
    rel_tid = jnp.where(rel < NUM_GEOM, 0,
                        jnp.where(rel < NUM_GEOM + NUM_POSS, 1, 2))                # (B, 1)
    is_pos = cls_row == rel          # (1,C) vs (B,1) -> (B,C), single compare
    in_table = tid_row == rel_tid    # (1,C) vs (B,1) -> (B,C), single compare

    zeros = jnp.zeros_like(exp_s)
    numerator = jnp.sum(jnp.where(is_pos, exp_s, zeros), axis=1, keepdims=True)    # (B, 1)
    table_sum = jnp.sum(jnp.where(in_table, exp_s, zeros), axis=1, keepdims=True)  # (B, 1)
    denominator = table_sum - numerator       # negatives only (exact to f32 rounding)

    # Single EUP log of the ratio == -(log(num+eps) - log(den+eps)).
    per_item = jnp.log((denominator + EPS_LOG) / (numerator + EPS_LOG))            # (B, 1)
    if valid_rows is not None:
        # Select (not multiply) so garbage from an over-read ragged last block can never
        # poison the sum via NaN/Inf propagation.
        per_item = jnp.where(valid_rows, per_item, 0.0)
    return (TEMPERATURE / BASE_TEMPERATURE) * jnp.sum(per_item)


def _loss_kernel_small(feat_ref, embt_ref, cls_ref, tid_ref, rel_ref, out_ref):
    partial = _partial_loss(feat_ref[...], embt_ref[...], rel_ref[...],
                            cls_ref[...], tid_ref[...], valid_rows=None)
    # Sublane/lane-dense (1, 8, 128) output slab: unmasked vst, no partial-tile store.
    out_ref[...] = jnp.full(out_ref.shape, partial, dtype=jnp.float32)


def _loss_kernel_tiled(nrows_ref, feat_ref, embt_ref, cls_ref, tid_ref, rel_ref, out_ref):
    bt = feat_ref.shape[0]
    row0 = pl.program_id(0) * bt
    rows = row0 + jax.lax.broadcasted_iota(jnp.int32, (bt, 1), 0)
    valid = rows < nrows_ref[0]                      # masks the ragged last tile
    partial = _partial_loss(feat_ref[...], embt_ref[...], rel_ref[...],
                            cls_ref[...], tid_ref[...], valid_rows=valid)
    out_ref[...] = jnp.full(out_ref.shape, partial, dtype=jnp.float32)


def _pick_rows_per_tile(batch, feat_dim):
    """Shape-aware tile size: biggest row tile whose double-buffered f32 feats block stays
    within a ~20 MiB VMEM budget (safe for v7x's 64 MiB physical / 32 MiB scoped VMEM),
    capped at 8192 rows; when more than one tile is needed, use an even, balanced tile
    count so both v7x TensorCores get work."""
    budget_bytes = 20 * 1024 * 1024
    max_rows = max(8, (budget_bytes // (2 * feat_dim * 4)) // 8 * 8)
    bt = min(8192, max_rows)
    if batch > bt:
        n_tiles = -(-batch // bt)
        if n_tiles % 2:
            n_tiles += 1                              # even tile count for 2-TC megacore
        bt = max(8, ((-(-batch // n_tiles) + 7) // 8) * 8)
    return bt


def supcon_loss(predicted_txt_embeds, class_table_t, relation_ids, *, rows_per_tile=None):
    """SupConLossGraph.forward.

    predicted_txt_embeds : (B, D) float32
    class_table_t        : (D, C_PAD) from prepare_class_embeddings()
    relation_ids         : (B,) or (B, 1) int32 global relation ids
    """
    feats = predicted_txt_embeds.astype(jnp.float32)
    B, D = feats.shape
    rel = relation_ids.reshape(B, 1).astype(jnp.int32)
    cls_row, tid_row = _class_mask_rows()
    tbl_bytes = class_table_t.size * class_table_t.dtype.itemsize

    if rows_per_tile is None:
        rows_per_tile = _pick_rows_per_tile(B, D)
    assert rows_per_tile % 8 == 0

    if B <= rows_per_tile:
        # Small batch: single invocation, no grid / index-map machinery.
        out = pl.pallas_call(
            _loss_kernel_small,
            out_shape=jax.ShapeDtypeStruct((1, 8, 128), jnp.float32),
            in_specs=[pl.BlockSpec(memory_space=pltpu.MemorySpace.VMEM)] * 5,
            out_specs=pl.BlockSpec(memory_space=pltpu.MemorySpace.VMEM),
            cost_estimate=pl.CostEstimate(
                flops=2 * B * D * C_PAD,
                transcendentals=B * (C_PAD + 2),
                bytes_accessed=B * D * 4 + tbl_bytes + B * 4 + 2 * C_PAD * 4 + 8 * 128 * 4),
        )(feats, class_table_t, cls_row, tid_row, rel)
        return out[0, 0, 0]

    # Larger batch: tile over rows; each tile writes its own lane-dense partial-sum block,
    # so the grid axis is "parallel" (both TensorCores on v7x).  No host-side padding —
    # the ragged last tile is masked in-kernel using the scalar-prefetched row count.
    bt = rows_per_tile
    n_tiles = pl.cdiv(B, bt)
    nrows = jnp.array([B], jnp.int32)

    out = pl.pallas_call(
        _loss_kernel_tiled,
        out_shape=jax.ShapeDtypeStruct((n_tiles, 8, 128), jnp.float32),
        grid_spec=pltpu.PrefetchScalarGridSpec(
            num_scalar_prefetch=1,
            grid=(n_tiles,),
            in_specs=[
                pl.BlockSpec((bt, D), lambda i, n: (i, 0)),
                pl.BlockSpec((D, C_PAD), lambda i, n: (0, 0)),
                pl.BlockSpec((1, C_PAD), lambda i, n: (0, 0)),
                pl.BlockSpec((1, C_PAD), lambda i, n: (0, 0)),
                pl.BlockSpec((bt, 1), lambda i, n: (i, 0)),
            ],
            out_specs=pl.BlockSpec((1, 8, 128), lambda i, n: (i, 0, 0)),
        ),
        compiler_params=pltpu.CompilerParams(
            dimension_semantics=("parallel",),
            vmem_limit_bytes=32 * 1024 * 1024),
        cost_estimate=pl.CostEstimate(
            flops=2 * B * D * C_PAD,
            transcendentals=B * (C_PAD + 2),
            bytes_accessed=(B * D * 4 + tbl_bytes + B * 4 + 2 * C_PAD * 4
                            + n_tiles * 8 * 128 * 4)),
    )(nrows, feats, class_table_t, cls_row, tid_row, rel)
    return jnp.sum(out[:, 0, 0])


def reference_loss(feats, emb, rel_ids):
    """Pure-JAX mirror of the PyTorch forward (per-item Python loop)."""
    total = jnp.float32(0.0)
    for b in range(feats.shape[0]):
        f = feats[b]
        f = f / jnp.maximum(jnp.linalg.norm(f), EPS_NORM)
        r = int(rel_ids[b])
        if r < NUM_GEOM:
            s, e = 0, NUM_GEOM
        elif r < NUM_GEOM + NUM_POSS:
            s, e = NUM_GEOM, NUM_GEOM + NUM_POSS
        else:
            s, e = NUM_GEOM + NUM_POSS, NUM_CLASSES
        pos = emb[r]
        neg = jnp.concatenate([emb[s:r], emb[r + 1:e]], axis=0)
        num = jnp.exp(jnp.sum(f * pos) / TEMPERATURE)
        den = jnp.sum(jnp.exp(neg @ f / TEMPERATURE))
        total = total + (-(jnp.log(num + EPS_LOG) - jnp.log(den + EPS_LOG)))
    return (TEMPERATURE / BASE_TEMPERATURE) * total


if __name__ == "__main__":
    D = 32
    key = jax.random.PRNGKey(0)
    k_emb, k_feat, k_feat2, k_rel2 = jax.random.split(key, 4)

    # Deterministic stand-in for the CLIP text embeddings (geom | poss | sem rows),
    # L2-normalized as in the torch module's _initialize_embeddings.
    all_emb = jax.random.normal(k_emb, (NUM_CLASSES, D), dtype=jnp.float32)
    all_emb = all_emb / jnp.maximum(
        jnp.linalg.norm(all_emb, axis=1, keepdims=True), EPS_NORM)
    table_f32 = prepare_class_embeddings(all_emb, dtype=jnp.float32)   # tight-tol checks
    table_bf16 = prepare_class_embeddings(all_emb)                     # default bf16 path

    # --- small batch: single-invocation path ---
    B = 4
    feats = jax.random.normal(k_feat, (B, D), dtype=jnp.float32)
    relation_ids = jnp.array([3, 17, 40, 0], dtype=jnp.int32)  # one per table + extra geom
    ref = reference_loss(feats, all_emb, relation_ids)

    loss_f32 = jax.block_until_ready(supcon_loss(feats, table_f32, relation_ids))
    assert jnp.allclose(loss_f32, ref, rtol=1e-4, atol=1e-4), (loss_f32, ref)

    loss_bf16 = jax.block_until_ready(supcon_loss(feats, table_bf16, relation_ids))
    # bf16 matmul operands (f32 accumulation): ~8-bit mantissa on operands -> looser tol.
    assert jnp.allclose(loss_bf16, ref, rtol=2e-2, atol=2e-2), (loss_bf16, ref)

    # --- larger batch: exercises the row-tiled "parallel" grid path with a ragged last
    #     tile (no host-side padding; invalid rows masked in-kernel) ---
    B2 = 20
    feats2 = jax.random.normal(k_feat2, (B2, D), dtype=jnp.float32)
    rel2 = jax.random.randint(k_rel2, (B2,), 0, NUM_CLASSES, dtype=jnp.int32)
    ref2 = reference_loss(feats2, all_emb, rel2)

    loss2_f32 = jax.block_until_ready(
        supcon_loss(feats2, table_f32, rel2, rows_per_tile=8))
    assert jnp.allclose(loss2_f32, ref2, rtol=1e-4, atol=1e-4), (loss2_f32, ref2)

    loss2_bf16 = jax.block_until_ready(
        supcon_loss(feats2, table_bf16, rel2, rows_per_tile=8))
    assert jnp.allclose(loss2_bf16, ref2, rtol=2e-2, atol=2e-2), (loss2_bf16, ref2)

    print("KERNEL_OK")
</pallas_src>

<mosaic_0001>
module attributes {stable_mosaic.version = 11 : i64} {
  func.func @_loss_kernel_small(%arg0: memref<4x32xf32, #tpu.memory_space<vmem>>, %arg1: memref<32x128xf32, #tpu.memory_space<vmem>>, %arg2: memref<1x128xi32, #tpu.memory_space<vmem>>, %arg3: memref<1x128xi32, #tpu.memory_space<vmem>>, %arg4: memref<4x1xi32, #tpu.memory_space<vmem>>, %arg5: memref<1x8x128xf32, #tpu.memory_space<vmem>>) attributes {dimension_semantics = [], scalar_prefetch = 0 : i64, scratch_operands = 0 : i64, tpu.core_type = #tpu.core_type<tc>} {
    %c0 = arith.constant 0 : index
    %c0_0 = arith.constant 0 : index
    %0 = vector.load %arg0[%c0, %c0_0] : memref<4x32xf32, #tpu.memory_space<vmem>>, vector<4x32xf32>
    %c0_1 = arith.constant 0 : index
    %c0_2 = arith.constant 0 : index
    %1 = vector.load %arg1[%c0_1, %c0_2] : memref<32x128xf32, #tpu.memory_space<vmem>>, vector<32x128xf32>
    %c0_3 = arith.constant 0 : index
    %c0_4 = arith.constant 0 : index
    %2 = vector.load %arg4[%c0_3, %c0_4] : memref<4x1xi32, #tpu.memory_space<vmem>>, vector<4x1xi32>
    %c0_5 = arith.constant 0 : index
    %c0_6 = arith.constant 0 : index
    %3 = vector.load %arg2[%c0_5, %c0_6] : memref<1x128xi32, #tpu.memory_space<vmem>>, vector<1x128xi32>
    %c0_7 = arith.constant 0 : index
    %c0_8 = arith.constant 0 : index
    %4 = vector.load %arg3[%c0_7, %c0_8] : memref<1x128xi32, #tpu.memory_space<vmem>>, vector<1x128xi32>
    %5 = arith.mulf %0, %0 : vector<4x32xf32>
    %cst = arith.constant dense<0.000000e+00> : vector<4xf32>
    %6 = vector.multi_reduction <add>, %5, %cst [1] : vector<4x32xf32> to vector<4xf32>
    %7 = vector.shape_cast %6 : vector<4xf32> to vector<4x1xf32>
    %cst_9 = arith.constant 1.000000e-24 : f32
    %8 = vector.broadcast %cst_9 : f32 to vector<4x1xf32>
    %9 = arith.maximumf %7, %8 : vector<4x1xf32>
    %10 = math.rsqrt %9 : vector<4x1xf32>
    %cst_10 = arith.constant 14.2857141 : f32
    %11 = vector.broadcast %cst_10 : f32 to vector<4x1xf32>
    %12 = arith.mulf %10, %11 : vector<4x1xf32>
    %13 = vector.broadcast %12 : vector<4x1xf32> to vector<4x32xf32>
    %14 = arith.mulf %0, %13 : vector<4x32xf32>
    %cst_11 = arith.constant dense<0.000000e+00> : vector<4x128xf32>
    %15 = tpu.matmul %14, %1, %cst_11 {dimension_numbers = #tpu.dot_dimension_numbers<[1], [0], [0], [1], [0, 0, 1, 1], [], []>} : vector<4x32xf32>, vector<32x128xf32>, vector<4x128xf32> -> vector<4x128xf32>
    %16 = math.exp %15 : vector<4x128xf32>
    %c15_i32 = arith.constant 15 : i32
    %17 = vector.broadcast %c15_i32 : i32 to vector<4x1xi32>
    %18 = arith.cmpi slt, %2, %17 : vector<4x1xi32>
    %c26_i32 = arith.constant 26 : i32
    %19 = vector.broadcast %c26_i32 : i32 to vector<4x1xi32>
    %20 = arith.cmpi slt, %2, %19 : vector<4x1xi32>
    %c1_i32 = arith.constant 1 : i32
    %c2_i32 = arith.constant 2 : i32
    %21 = vector.broadcast %c1_i32 : i32 to vector<4x1xi32>
    %22 = vector.broadcast %c2_i32 : i32 to vector<4x1xi32>
    %23 = arith.select %20, %21, %22 : vector<4x1xi1>, vector<4x1xi32>
    %c0_i32 = arith.constant 0 : i32
    %24 = vector.broadcast %c0_i32 : i32 to vector<4x1xi32>
    %25 = arith.select %18, %24, %23 : vector<4x1xi1>, vector<4x1xi32>
    %26 = vector.broadcast %3 : vector<1x128xi32> to vector<4x128xi32>
    %27 = vector.broadcast %2 : vector<4x1xi32> to vector<4x128xi32>
    %28 = arith.cmpi eq, %26, %27 : vector<4x128xi32>
    %29 = vector.broadcast %4 : vector<1x128xi32> to vector<4x128xi32>
    %30 = vector.broadcast %25 : vector<4x1xi32> to vector<4x128xi32>
    %31 = arith.cmpi eq, %29, %30 : vector<4x128xi32>
    %cst_12 = arith.constant 0.000000e+00 : f32
    %32 = vector.broadcast %cst_12 : f32 to vector<4x128xf32>
    %33 = arith.select %28, %16, %32 : vector<4x128xi1>, vector<4x128xf32>
    %cst_13 = arith.constant dense<0.000000e+00> : vector<4xf32>
    %34 = vector.multi_reduction <add>, %33, %cst_13 [1] : vector<4x128xf32> to vector<4xf32>
    %35 = vector.shape_cast %34 : vector<4xf32> to vector<4x1xf32>
    %36 = arith.select %31, %16, %32 : vector<4x128xi1>, vector<4x128xf32>
    %cst_14 = arith.constant dense<0.000000e+00> : vector<4xf32>
    %37 = vector.multi_reduction <add>, %36, %cst_14 [1] : vector<4x128xf32> to vector<4xf32>
    %38 = vector.shape_cast %37 : vector<4xf32> to vector<4x1xf32>
    %39 = arith.subf %38, %35 : vector<4x1xf32>
    %cst_15 = arith.constant 1.000000e-07 : f32
    %40 = vector.broadcast %cst_15 : f32 to vector<4x1xf32>
    %41 = arith.addf %39, %40 : vector<4x1xf32>
    %cst_16 = arith.constant 1.000000e-07 : f32
    %42 = vector.broadcast %cst_16 : f32 to vector<4x1xf32>
    %43 = arith.addf %35, %42 : vector<4x1xf32>
    %44 = arith.divf %41, %43 : vector<4x1xf32>
    %45 = math.log %44 : vector<4x1xf32>
    %46 = vector.shape_cast %45 : vector<4x1xf32> to vector<1x4x1xf32>
    %cst_17 = arith.constant dense<0.000000e+00> : vector<1xf32>
    %47 = vector.multi_reduction <add>, %46, %cst_17 [1, 2] : vector<1x4x1xf32> to vector<1xf32>
    %48 = vector.shape_cast %47 : vector<1xf32> to vector<1x1x1xf32>
    %49 = vector.extract %48[0, 0, 0] : f32 from vector<1x1x1xf32>
    %cst_18 = arith.constant 1.000000e+00 : f32
    %50 = arith.mulf %cst_18, %49 : f32
    %51 = vector.broadcast %50 : f32 to vector<1x8x128xf32>
    %c0_19 = arith.constant 0 : index
    %c0_20 = arith.constant 0 : index
    %c0_21 = arith.constant 0 : index
    %52 = vector.load %arg5[%c0_19, %c0_20, %c0_21] : memref<1x8x128xf32, #tpu.memory_space<vmem>>, vector<1x8x128xf32>
    tpu.vector_store %arg5[%c0_19, %c0_20, %c0_21], %51 {strides = array<i32>} : memref<1x8x128xf32, #tpu.memory_space<vmem>>, vector<1x8x128xf32>,
    return
  }
}

</mosaic_0001>

<bundles_post_ra>
// kernel: tpu_custom_call.1
= control target key start
LH: loop header
LB: loop body
LE: loop exit
PB: predicated region body
PF: predicated region fallthrough
CT: control target
= control target key end

     0   :  { %10 = vsyncpa [#allocation3], 0  ;;  %s331_s0 = inlined_call_operand.vmem [shape: f32[4,32], index: 0, kind: input, shape index: {}]   ;;  %s332_s1 = inlined_call_operand.hbm [shape: f32[32,128], index: 1, kind: input, shape index: {}]   ;;  %s333_s2 = inlined_call_operand.vmem [shape: s32[1,128], index: 2, kind: input, shape index: {}]   ;;  %s334_s3 = inlined_call_operand.vmem [shape: s32[1,128], index: 3, kind: input, shape index: {}]   ;;  %s335_s4 = inlined_call_operand.vmem [shape: s32[4,1], index: 4, kind: input, shape index: {}]   ;;  %s336_s5 = inlined_call_operand.hbm [shape: f32[1,8,128], index: 5, kind: output, shape index: {}]  }
   0x1   :  { %11 = vsyncpa [#allocation4], 0  ;;  %s275_s18 = smov [#allocation2]  }
   0x2   :  { %s19_s19 = sshll.u32 %s275_s18, 4  ;;  %s20_s19 = int_to_ptr.vmem [resolvable:$true] %s19_s19 }
   0x3   :  { %s239_s20 = scalar_lea.vmem %s20_s19, 512  ;;  %p244_p1 = scmp.lt.s32.totalorder %s20_s19, %s20_s19 }
   0x4   :  { %p240_p0 = scmp.ne.s32.totalorder %s20_s19, %s239_s20  ;;  %p245_p2 = scmp.lt.s32.totalorder %s239_s20, %s239_s20 }
   0x6   :  { %p246_p3 = por %p245_p2, %p244_p1 }
   0x8   :  { %p247_p4 = pnand %p246_p3, %p240_p0 }
   0xa   :  { %250 = shalt.err (!%p247_p4)
}
   0xb   :  { %s276_s21 = smov 128   ;;  %s277_s22 = smov 8  }
   0xc   :  { %25 = dma.hbm_to_vmem [thread:$0]  %s332_s1, 512, %s20_s19, [#allocation3], %s276_s21, %s276_s21, %s277_s22  }
   0xd   :  { %271 = dma.done.wait [#allocation3], 512  }
   0xe   :  { %272 = vsyncadd [#allocation3], 4294966784  ;;  %v35_v0 = vld [vmem:[%s331_s0] sm:$0xf]  ;;  %vm44_vm0 = vcmask 257024   ;;  %v278_v3 = vmov 0.0  }
   0xf   :  { %v43_v1 = vmul.f32 %v35_v0, %v35_v0  ;;  %200 = vmatprep.subr.mxu0 %v278_v3  ;;  %v39_v4 = vld [vmem:[#allocation2 + $0x18] sm:$0xff]  ;;  %v38_v5 = vld [vmem:[#allocation2 + $0x10] sm:$0xff]  ;;  %v37_v6 = vld [vmem:[#allocation2 + $0x8] sm:$0xff]  ;;  %vm279_vm1 = vmmov 0   ;;  %v280_v9 = vmov 0   ;;  %v281_v10 = vmov 2  }
  0x10   :  { %201 = vmatpush3.msra.mxu0 %v39_v4  ;;  %v36_v7 = vld [vmem:[#allocation2] sm:$0xff]  ;;  %208 = vmatprep.mubr.msk.f32.mxu0 %vm279_vm1, %v278_v3  ;;  %vm52_vm4 = vcmask 261120   ;;  %vm149_vm6 = vcmask 1043456   ;;  %vm164_vm8 = vcmask 3072  }
  0x11   :  { %v45_v2 = vsel %vm44_vm0, %v43_v1, 0.0  ;;  %202 = vmatprep.subr.mxu0 %v278_v3  ;;  %v40_v8 = vld [vmem:[%s335_s4] sm:$0xf]  ;;  %222 = vset.pattern.permute.xlu1 %v280_v9 }
  0x12   :  { %46 = vadd.xlane.f32.xlu0 %v45_v2  ;;  %203 = vmatpush3.msra.mxu0 %v38_v5  ;;  %vm128_vm2 = vcmp.lt.s32.totalorder %v40_v8, 15  ;;  %vm129_vm3 = vcmp.lt.s32.totalorder %v40_v8, 26  ;;  %v193_v21 = vld [vmem:[%s333_s2] ss:$0 sm:$0xff]  ;;  %s282_s2 = smov [#allocation5]  }
  0x13   :  { %204 = vmatprep.subr.mxu0 %v278_v3  ;;  %221 = vset.pattern.permute.xlu0 %v280_v9  ;;  %v130_v11 = vsel %vm129_vm3, 1, %v281_v10  ;;  %v194_v23 = vld [vmem:[%s334_s3] ss:$0 sm:$0xff]  ;;  %s183_s3 = sshll.u32 %s282_s2, 4  ;;  %s184_s3 = int_to_ptr.vmem [resolvable:$true] %s183_s3 }
  0x14   :  { %205 = vmatpush3.msra.mxu0 %v37_v6  ;;  %v131_v12 = vsel %vm128_vm2, 0, %v130_v11  ;;  %s251_s6 = scalar_lea.vmem %s184_s3, 128  ;;  %p256_p6 = scmp.lt.s32.totalorder %s184_s3, %s184_s3 }
  0x15   :  { %206 = vmatprep.subr.mxu0 %v278_v3  ;;  %145 = vperm.xlu1 %222, %v131_v12   ;;  %p252_p5 = scmp.ne.s32.totalorder %s184_s3, %s251_s6  ;;  %p257_p7 = scmp.lt.s32.totalorder %s251_s6, %s251_s6 }
  0x16   :  { %207 = vmatpush3.msra.mxu0 %v36_v7 }
  0x17   :  { %p258_p8 = por %p257_p7, %p256_p6 }
  0x19   :  { %p259_p9 = pnand %p258_p8, %p252_p5 }
  0x28   :  { %137 = vperm.xlu0 %221, %v40_v8  }
  0x90   :  { %v146_v24 = vpop.permute.xlu1 %145 }
  0x91   :  { %vm147_vm7 = vcmp.eq.s32.totalorder %v194_v23, %v146_v24 }
  0x9b   :  { %v47_v13 = vpop.xlane.xlu0 %46 }
  0x9c   :  { %v48_v14 = vmax.f32 %v47_v13, 1e-24 }
  0x9e   :  { %223 = vrsqrt.f32 %v48_v14 }
  0xa3   :  { %v138_v22 = vpop.permute.xlu0 %137 }
  0xa4   :  { %vm139_vm5 = vcmp.eq.s32.totalorder %v193_v21, %v138_v22 }
  0xab   :  { %v224_v15 = vpop.eup %223 }
  0xac   :  { %v50_v16 = vmul.f32 14.285714, %v224_v15 }
  0xae   :  { %v51_v17 = vmul.f32 %v50_v16, %v35_v0 }
  0xb0   :  { %209 = vmatmul.mubr.msk.f32.vlgmr.msra.gmra.mxu0 %vm52_vm4, %v51_v17 }
 0x170   :  { %v122_v18 = vpop.f32.mrf.mxu0 }
 0x171   :  { %v126_v19 = vmul.f32 1.442695, %v122_v18 }
 0x172   :  { %v210_v20 = vpop.f32.mrf.mxu0 }
 0x173   :  { %225 = vpow2.f32 %v126_v19 }
 0x180   :  { %v226_v25 = vpop.eup %225 }
 0x181   :  { %v148_v26 = vsel %vm139_vm5, %v226_v25, 0.0  ;;  %v153_v28 = vsel %vm147_vm7, %v226_v25, 0.0 }
 0x182   :  { %v150_v27 = vsel %vm149_vm6, %v148_v26, 0.0  ;;  %v154_v29 = vsel %vm149_vm6, %v153_v28, 0.0 }
 0x183   :  { %151 = vadd.xlane.f32.xlu1 %v150_v27 }
 0x187   :  { %155 = vadd.xlane.f32.xlu1 %v154_v29 }
 0x20c   :  { %v152_v30 = vpop.xlane.xlu1 %151 }
 0x20d   :  { %v159_v31 = vadd.f32 1e-07, %v152_v30 }
 0x20f   :  { %227 = vrcp.f32 %v159_v31 }
 0x210   :  { %v156_v32 = vpop.xlane.xlu1 %155 }
 0x211   :  { %v157_v33 = vsub.f32 %v156_v32, %v152_v30 }
 0x213   :  { %v158_v34 = vadd.f32 1e-07, %v157_v33 }
 0x21c   :  { %v228_v35 = vpop.eup %227 }
 0x21d   :  { %v161_v36 = vmul.f32 %v228_v35, %v158_v34 }
 0x21f   :  { %229 = vlog2.f32 %v161_v36 }
 0x22c   :  { %v230_v37 = vpop.eup %229 }
 0x22d   :  { %v163_v38 = vmul.f32 0.6931472, %v230_v37 }
 0x22f   :  { %v165_v39 = vsel %vm164_vm8, %v163_v38, 0.0 }
 0x230   :  { %166 = vadd.xlane.f32.xlu1 %v165_v39 }
 0x2b9   :  { %v167_v40 = vpop.xlane.xlu1 %166 }
 0x2ba   :  { %v168_v41 = vrot.slane %v167_v40, 4 }
 0x2bc   :  { %v169_v42 = vadd.f32 %v168_v41, %v167_v40 }
 0x2be   :  { %v170_v43 = vrot.slane %v169_v42, 2 }
 0x2c0   :  { %v171_v44 = vadd.f32 %v170_v43, %v169_v42 }
 0x2c2   :  { %v172_v45 = vrot.slane %v171_v44, 1 }
 0x2c4   :  { %v173_v46 = vadd.f32 %v172_v45, %v171_v44 }
 0x2c6   :  { %211 = vpush %v173_v46 }
 0x2f7   :  { %s212_s30 = spop %211 }
 0x2f8   :  { %v175_v47 = vstv %s212_s30 }
 0x2f9   :  { %176 = vst [vmem:[#allocation5] sm:$0xff] %v175_v47 }
 0x2fa   :  { %262 = shalt.err (!%p259_p9)
}
 0x2fb   :  { %186 = dma.vmem_to_hbm [thread:$0]  %s184_s3, 128, %s336_s5, [#allocation4]  }
 0x2fc   :  { %273 = dma.done.wait [#allocation4], 128  }
 0x2fd   :  { %274 = vsyncadd [#allocation4], 4294967168 }
 0x2fe   :  { %190 = vsyncpa [#allocation3], 1 }
 0x2ff   :  { %191 = vsyncpa [#allocation4], 1 }

</bundles_post_ra>
